<compile_context>
chip_gen: v6e
topology: v6e:2x2x1
jax: 0.10.0
libtpu: 0.0.40
codegen_flags: <defaults>
</compile_context>

<pallas_src>
import jax
import jax.numpy as jnp
from jax import lax
from jax.experimental import pallas as pl
from jax.experimental.pallas import tpu as pltpu


def _round_up(x, m):
    return (x + m - 1) // m * m


def _lora_kernel(x_ref, w1_ref, w2_ref, o_ref):
    # x_ref:  [TM, in_features]        (activation row tile)
    # w1_ref: [rank, in_features]      (first Linear weight, PyTorch layout)
    # w2_ref: [out_features, rank]     (second Linear weight, PyTorch layout)
    # o_ref:  [TM, out_features]
    x = x_ref[...]

    # h = x @ w1.T  -> [TM, rank]; contract in_features, accumulate in f32.
    h = lax.dot_general(
        x,
        w1_ref[...],
        dimension_numbers=(((1,), (1,)), ((), ())),
        preferred_element_type=jnp.float32,
    )

    # y = h @ w2.T  -> [TM, out_features]; feed MXU the activation dtype,
    # keep f32 accumulation.
    y = lax.dot_general(
        h.astype(x.dtype),
        w2_ref[...],
        dimension_numbers=(((1,), (1,)), ((), ())),
        preferred_element_type=jnp.float32,
    )

    o_ref[...] = y.astype(o_ref.dtype)


def lora_adapter(x, w1, w2, *, block_m=512):
    """LoRA forward: x @ w1.T @ w2.T  (PyTorch nn.Linear convention).

    x:  [..., in_features]
    w1: [rank, in_features]        (first Linear weight)
    w2: [out_features, rank]       (second Linear weight)
    returns [..., out_features]
    """
    in_features = x.shape[-1]
    rank, in_features_w = w1.shape
    out_features, rank_w = w2.shape
    assert in_features == in_features_w, "w1 must be [rank, in_features]"
    assert rank == rank_w, "w2 must be [out_features, rank]"
    lead = x.shape[:-1]

    # Flatten leading dims; pad rows to a multiple of the row tile.
    x2d = x.reshape(-1, in_features)
    m = x2d.shape[0]
    tm = min(block_m, _round_up(m, 16))  # 16-row aligned (covers f32 and bf16)
    m_pad = _round_up(m, tm)
    if m_pad != m:
        x2d = jnp.pad(x2d, ((0, m_pad - m), (0, 0)))

    grid = (m_pad // tm,)

    act_bytes = jnp.dtype(x.dtype).itemsize
    w_bytes = jnp.dtype(w1.dtype).itemsize
    cost = pl.CostEstimate(
        flops=2 * m_pad * rank * (in_features + out_features),
        transcendentals=0,
        bytes_accessed=m_pad * (in_features + out_features) * act_bytes
        + (rank * in_features + out_features * rank) * w_bytes,
    )

    out2d = pl.pallas_call(
        _lora_kernel,
        out_shape=jax.ShapeDtypeStruct((m_pad, out_features), x.dtype),
        grid_spec=pltpu.PrefetchScalarGridSpec(
            num_scalar_prefetch=0,
            grid=grid,
            in_specs=[
                # Activation tile: blocked along M.
                pl.BlockSpec((tm, in_features), lambda i: (i, 0)),
                # Weights: full, grid-invariant blocks (stay resident in VMEM).
                pl.BlockSpec((rank, in_features), lambda i: (0, 0)),
                pl.BlockSpec((out_features, rank), lambda i: (0, 0)),
            ],
            out_specs=pl.BlockSpec((tm, out_features), lambda i: (i, 0)),
        ),
        compiler_params=pltpu.CompilerParams(
            dimension_semantics=("parallel",),  # v7x: shard M tiles across TCs
            vmem_limit_bytes=56 * 1024 * 1024,
        ),
        cost_estimate=cost,
    )(x2d, w1, w2)

    if m_pad != m:
        out2d = out2d[:m]
    return out2d.reshape(*lead, out_features)
    # TODO(synk): for very large out_features (>8-16K), add a second grid axis
    # tiling N with w2 blocked on its first dim to bound the output VMEM tile.


if __name__ == "__main__":
    # Small shapes consistent with the module: batch=2, seq=8, hidden=32.
    batch, seq = 2, 8
    in_features, out_features, rank = 32, 32, 4

    key = jax.random.PRNGKey(0)
    kx, k1, k2 = jax.random.split(key, 3)

    x = jax.random.normal(kx, (batch, seq, in_features), dtype=jnp.float32)
    # PyTorch Linear weight shapes: [out, in].
    w1 = jax.random.normal(k1, (rank, in_features), dtype=jnp.float32) * 0.1
    w2 = jax.random.normal(k2, (out_features, rank), dtype=jnp.float32) * 0.1

    out = lora_adapter(x, w1, w2)
    out = jax.block_until_ready(out)

    # Reference check (same semantics as the PyTorch module).
    ref = jnp.einsum("bsr,or->bso", jnp.einsum("bsi,ri->bsr", x, w1), w2)
    assert out.shape == (batch, seq, out_features)
    assert jnp.allclose(out, ref, atol=1e-5, rtol=1e-5)

    # Ragged-M path (exercises wrapper-side row padding: M = 15).
    x2 = jax.random.normal(kx, (3, 5, in_features), dtype=jnp.float32)
    out2 = jax.block_until_ready(lora_adapter(x2, w1, w2))
    ref2 = jnp.einsum("bsr,or->bso", jnp.einsum("bsi,ri->bsr", x2, w1), w2)
    assert out2.shape == (3, 5, out_features)
    assert jnp.allclose(out2, ref2, atol=1e-5, rtol=1e-5)

    print("KERNEL_OK")
</pallas_src>

<mosaic_0001>
module attributes {stable_mosaic.version = 11 : i64} {
  func.func @_lora_kernel(%arg0: i32, %arg1: memref<16x32xf32, #tpu.memory_space<vmem>>, %arg2: memref<4x32xf32, #tpu.memory_space<vmem>>, %arg3: memref<32x4xf32, #tpu.memory_space<vmem>>, %arg4: memref<16x32xf32, #tpu.memory_space<vmem>>) attributes {dimension_semantics = [#tpu.dimension_semantics<parallel>], iteration_bounds = array<i64: 1>, scalar_prefetch = 0 : i64, scratch_operands = 0 : i64, tpu.core_type = #tpu.core_type<tc>, window_params = [{transform_indices = @transform_0, window_bounds = array<i64: 16, 32>}, {pipeline_mode = #tpu.pipeline_mode<synchronous>, transform_indices = @transform_1, window_bounds = array<i64: 4, 32>}, {pipeline_mode = #tpu.pipeline_mode<synchronous>, transform_indices = @transform_2, window_bounds = array<i64: 32, 4>}, {transform_indices = @transform_3, window_bounds = array<i64: 16, 32>}]} {
    %c0 = arith.constant 0 : index
    %c0_0 = arith.constant 0 : index
    %0 = vector.load %arg1[%c0, %c0_0] : memref<16x32xf32, #tpu.memory_space<vmem>>, vector<16x32xf32>
    %c0_1 = arith.constant 0 : index
    %c0_2 = arith.constant 0 : index
    %1 = vector.load %arg2[%c0_1, %c0_2] : memref<4x32xf32, #tpu.memory_space<vmem>>, vector<4x32xf32>
    %cst = arith.constant dense<0.000000e+00> : vector<16x4xf32>
    %2 = tpu.matmul %0, %1, %cst {dimension_numbers = #tpu.dot_dimension_numbers<[1], [1], [0], [0], [0, 0, 1, 0], [], []>} : vector<16x32xf32>, vector<4x32xf32>, vector<16x4xf32> -> vector<16x4xf32>
    %c0_3 = arith.constant 0 : index
    %c0_4 = arith.constant 0 : index
    %3 = vector.load %arg3[%c0_3, %c0_4] : memref<32x4xf32, #tpu.memory_space<vmem>>, vector<32x4xf32>
    %cst_5 = arith.constant dense<0.000000e+00> : vector<16x32xf32>
    %4 = tpu.matmul %2, %3, %cst_5 {dimension_numbers = #tpu.dot_dimension_numbers<[1], [1], [0], [0], [0, 0, 1, 0], [], []>} : vector<16x4xf32>, vector<32x4xf32>, vector<16x32xf32> -> vector<16x32xf32>
    %c0_6 = arith.constant 0 : index
    %c0_7 = arith.constant 0 : index
    %5 = vector.load %arg4[%c0_6, %c0_7] : memref<16x32xf32, #tpu.memory_space<vmem>>, vector<16x32xf32>
    tpu.vector_store %arg4[%c0_6, %c0_7], %4 {strides = array<i32>} : memref<16x32xf32, #tpu.memory_space<vmem>>, vector<16x32xf32>,
    return
  }
  func.func @transform_0(%arg0: i32) -> (i32, i32) {
    %c0_i32 = arith.constant 0 : i32
    %c0_i32_0 = arith.constant 0 : i32
    return %arg0, %c0_i32 : i32, i32
  }
  func.func @transform_1(%arg0: i32) -> (i32, i32) {
    %c0_i32 = arith.constant 0 : i32
    %c0_i32_0 = arith.constant 0 : i32
    %c0_i32_1 = arith.constant 0 : i32
    return %c0_i32, %c0_i32_0 : i32, i32
  }
  func.func @transform_2(%arg0: i32) -> (i32, i32) {
    %c0_i32 = arith.constant 0 : i32
    %c0_i32_0 = arith.constant 0 : i32
    %c0_i32_1 = arith.constant 0 : i32
    return %c0_i32, %c0_i32_0 : i32, i32
  }
  func.func @transform_3(%arg0: i32) -> (i32, i32) {
    %c0_i32 = arith.constant 0 : i32
    %c0_i32_0 = arith.constant 0 : i32
    return %arg0, %c0_i32 : i32, i32
  }
}

</mosaic_0001>

<bundles_post_ra>
// kernel: tpu_custom_call.1
= control target key start
LH: loop header
LB: loop body
LE: loop exit
PB: predicated region body
PF: predicated region fallthrough
CT: control target
= control target key end

     0   :  { %vm18_vm0 = vcmask 261120   ;;  %vm107_vm1 = vcmask 31744   ;;  %s341_s0 = inlined_call_operand.vmem [shape: f32[16,32], index: 0, kind: input, shape index: {}]   ;;  %s342_s1 = inlined_call_operand.vmem [shape: f32[4,32], index: 1, kind: input, shape index: {}]   ;;  %s343_s2 = inlined_call_operand.vmem [shape: f32[32,4], index: 2, kind: input, shape index: {}]   ;;  %s344_s3 = inlined_call_operand.hbm [shape: f32[16,32], index: 3, kind: output, shape index: {}]  }
   0x1   :  { %v17_v0 = vld [vmem:[%s342_s1] sm:$0xf]  ;;  %v106_v2 = vld [vmem:[%s343_s2 + $0x18] sm:$0xff]  ;;  %v105_v3 = vld [vmem:[%s343_s2 + $0x10] sm:$0xff] }
   0x2   :  { %v15_v1 = vld [vmem:[%s341_s0] sm:$0xff]  ;;  %237 = vmatprep.subr.msk.mxu0 %vm18_vm0, %v17_v0  ;;  %v16_v4 = vld [vmem:[%s341_s0 + $0x8] sm:$0xff]  ;;  %242 = vmatprep.subr.msk.mxu1 %vm107_vm1, %v106_v2 }
   0x3   :  { %239 = vmatprep.mubr.msk.f32.mxu0 %vm18_vm0, %v15_v1  ;;  %238 = vmatpush3.xpose.msk.msra.mxu0 %vm18_vm0, %v17_v0 }
   0x4   :  { %8 = vsyncpa [#allocation3], 0  ;;  %243 = vmatpush3.xpose.msk.msra.mxu1 %vm107_vm1, %v106_v2  ;;  %v104_v5 = vld [vmem:[%s343_s2 + $0x8] sm:$0xff]  ;;  %v103_v6 = vld [vmem:[%s343_s2] sm:$0xff]  ;;  %s278_s24 = smov [#allocation2]  }
   0x5   :  { %244 = vmatprep.subr.msk.mxu1 %vm107_vm1, %v105_v3  ;;  %s208_s25 = sshll.u32 %s278_s24, 4  ;;  %s209_s25 = int_to_ptr.vmem [resolvable:$true] %s208_s25 }
   0x6   :  { %240 = vmatmul.mubr.msk.f32.vlgmr.msra.gmra.mxu0 %vm18_vm0, %v16_v4  ;;  %s256_s2 = scalar_lea.vmem %s209_s25, 256  ;;  %p261_p1 = scmp.lt.s32.totalorder %s209_s25, %s209_s25 }
   0x7   :  { %p257_p0 = scmp.ne.s32.totalorder %s209_s25, %s256_s2  ;;  %p262_p2 = scmp.lt.s32.totalorder %s256_s2, %s256_s2 }
   0x8   :  { %245 = vmatpush3.xpose.msk.msra.mxu1 %vm107_vm1, %v105_v3 }
   0x9   :  { %246 = vmatprep.subr.msk.mxu1 %vm107_vm1, %v104_v5  ;;  %p263_p3 = por %p262_p2, %p261_p1 }
   0xb   :  { %p264_p4 = pnand %p263_p3, %p257_p0 }
   0xc   :  { %247 = vmatpush3.xpose.msk.msra.mxu1 %vm107_vm1, %v104_v5 }
   0xd   :  { %248 = vmatprep.subr.msk.mxu1 %vm107_vm1, %v103_v6 }
  0x10   :  { %249 = vmatpush3.xpose.msk.msra.mxu1 %vm107_vm1, %v103_v6 }
  0xc6   :  { %v241_v7 = vpop.f32.mrf.mxu0 }
  0xc8   :  { %v94_v8 = vpop.f32.mrf.mxu0 }
  0xc9   :  { %250 = vmatprep.mubr.msk.f32.mxu1 %vm107_vm1, %v94_v8 }
  0xca   :  { %251 = vmatmul.mubr.msk.f32.vlgmr.msra.gmra.mxu1 %vm107_vm1, %v241_v7 }
 0x18a   :  { %v252_v9 = vpop.f32.mrf.mxu1 }
 0x18b   :  { %202 = vst.msk [vmem:[#allocation2 + $0x8] sm:$0xff] %vm18_vm0, %v252_v9 }
 0x18c   :  { %v192_v10 = vpop.f32.mrf.mxu1 }
 0x18d   :  { %201 = vst.msk [vmem:[#allocation2] sm:$0xff] %vm18_vm0, %v192_v10 }
 0x18e   :  { %267 = shalt.err (!%p264_p4)
}
 0x18f   :  { %s279_s26 = smov 128   ;;  %s280_s27 = smov 8  }
 0x190   :  { %214 = dma.vmem_to_hbm [thread:$0]  %s209_s25, 256, %s344_s3, [#allocation3], %s279_s26, %s279_s26, %s280_s27  }
 0x191   :  { %276 = dma.done.wait [#allocation3], 256  }
 0x192   :  { %277 = vsyncadd [#allocation3], 4294967040 }
 0x193   :  { %218 = vsyncpa [#allocation3], 1 }

</bundles_post_ra>
